<compile_context>
chip_gen: v7x
topology: tpu7x:2x2x1
jax: 0.10.0
libtpu: 0.0.40
codegen_flags: <defaults>
</compile_context>

<pallas_src>
import jax
import jax.numpy as jnp
from jax.experimental import pallas as pl
from jax.experimental.pallas import tpu as pltpu


def _column_softmax_kernel(x_ref, o_ref):
    # x_ref / o_ref view: (Bt, D, At).  Softmax over axis 1 (D = sublane axis).
    x = x_ref[...]                                        # input dtype (bf16 ok)
    m = jnp.max(x, axis=1, keepdims=True)                 # max is exact in bf16
    # Fuse the f32 upcast into the exp argument: no block-sized f32 copy of x.
    e = jnp.exp(x.astype(jnp.float32) - m.astype(jnp.float32))   # [Bt, D, At] f32
    s = jnp.sum(e, axis=1, keepdims=True)                 # [Bt, 1, At] column sum
    # Exact normalize: kernel is HBM-bound, the divide costs no wall-clock time
    # and keeps columns summing to 1 (matches F.softmax exactly).
    o_ref[...] = (e / s).astype(o_ref.dtype)


def _round_up(x, m):
    return -(-x // m) * m


def _hw_params():
    """Per-generation (target_block_bytes, vmem_limit_bytes); conservative fallback."""
    try:
        vmem_phys = int(pltpu.get_tpu_info().vmem_capacity_bytes)
    except Exception:
        return 2 << 20, 32 << 20                 # safe everywhere
    if vmem_phys <= (64 << 20):                  # v7x: 64 MiB physical per TC
        return 4 << 20, 40 << 20
    return 6 << 20, 64 << 20                     # v5e / v6e: 128 MiB physical


def _choose_tiles(B, D, A, itemsize, target_bytes, block_cap_bytes):
    """Pick (Bt, At).  D (the reduction axis) is never tiled -> single-pass softmax."""
    slab = D * A * itemsize                      # bytes of one full (D, A) slab

    if slab <= block_cap_bytes:
        # Preferred path: keep A whole -> one contiguous HBM DMA per batch slab
        # and no masked lane-tail stores; pack batches up to target_bytes.
        bt = max(1, min(B, target_bytes // max(slab, 1)))
        if B >= 2:
            bt = min(bt, pl.cdiv(B, 2))          # >= 2 grid steps (v7x megacore)
        bt = pl.cdiv(B, pl.cdiv(B, bt))          # balanced: tail padding < 1 block
        if bt == B == 1 and A % 256 == 0 and slab >= (512 << 10):
            return 1, A // 2                     # B == 1: split lanes so both TCs work
        return int(bt), A

    # Large (D, A) slab: tile A (lane axis) in 128-lane multiples, keep D whole.
    if A <= 128:
        return 1, A
    lanes = (block_cap_bytes // (D * itemsize)) // 128 * 128
    # If even 128 lanes over full D bust the cap (D absurdly large) we still use
    # 128 lanes and lean on the vmem_limit headroom; a 2-pass D-tiled softmax is
    # not needed for this module's shapes.
    lanes = max(128, int(lanes))
    at = pl.cdiv(A, pl.cdiv(A, lanes))           # balanced along A
    at = min(A, _round_up(int(at), 128))         # block last dim: 128-multiple or full A
    return 1, int(at)


def column_softmax(r_prime: jax.Array) -> jax.Array:
    """Softmax over dim=1 of a [B, D, A] array (matches F.softmax(x, dim=1))."""
    B, D, A = r_prime.shape
    target_bytes, vmem_limit = _hw_params()
    # Per-block cap with headroom for double-buffered in+out plus f32 temporaries.
    block_cap = vmem_limit // 10
    target_bytes = min(target_bytes, block_cap)
    bt, at = _choose_tiles(B, D, A, r_prime.dtype.itemsize, target_bytes, block_cap)
    grid = (pl.cdiv(B, bt), pl.cdiv(A, at))
    spec = pl.BlockSpec((bt, D, at), lambda b, a: (b, 0, a))
    return pl.pallas_call(
        _column_softmax_kernel,
        out_shape=jax.ShapeDtypeStruct((B, D, A), r_prime.dtype),
        grid_spec=pltpu.PrefetchScalarGridSpec(
            num_scalar_prefetch=0,
            grid=grid,
            in_specs=[spec],
            out_specs=spec,
        ),
        compiler_params=pltpu.CompilerParams(
            # Both axes are embarrassingly parallel (D never tiled) -> shards
            # across v7x's 2 TensorCores; no-op on v5e/v6e.
            dimension_semantics=("parallel", "parallel"),
            vmem_limit_bytes=vmem_limit,
        ),
    )(r_prime)


if __name__ == "__main__":
    key = jax.random.PRNGKey(0)

    # Small shape consistent with the module's [batch, D, A] contract.
    B, D, A = 2, 16, 128
    r_prime = jax.random.normal(key, (B, D, A), dtype=jnp.float32)

    r = column_softmax(r_prime)
    jax.block_until_ready(r)

    # Exact-division normalize -> matches F.softmax / jax.nn.softmax tightly.
    ref = jax.nn.softmax(r_prime, axis=1)
    assert jnp.allclose(r, ref, atol=1e-5, rtol=1e-5), "mismatch vs reference"
    assert jnp.allclose(jnp.sum(r, axis=1), 1.0, atol=1e-5)

    # Second case: bf16 dtype, non-divisible batch -> exercises batch blocking
    # with a balanced (padded-tail) block.
    B2, D2, A2 = 5, 32, 256
    r_prime2 = jax.random.normal(jax.random.PRNGKey(1), (B2, D2, A2), dtype=jnp.bfloat16)
    r2 = column_softmax(r_prime2)
    jax.block_until_ready(r2)
    ref2 = jax.nn.softmax(r_prime2.astype(jnp.float32), axis=1)
    assert jnp.allclose(r2.astype(jnp.float32), ref2, atol=8e-3, rtol=8e-3)
    assert jnp.allclose(jnp.sum(r2.astype(jnp.float32), axis=1), 1.0, atol=8e-3)

    print("KERNEL_OK")
</pallas_src>

<mosaic_0001>
module attributes {stable_mosaic.version = 11 : i64} {
  func.func @_column_softmax_kernel(%arg0: i32, %arg1: i32, %arg2: memref<1x16x128xf32, #tpu.memory_space<vmem>>, %arg3: memref<1x16x128xf32, #tpu.memory_space<vmem>>) attributes {dimension_semantics = [#tpu.dimension_semantics<parallel>, #tpu.dimension_semantics<parallel>], iteration_bounds = array<i64: 2, 1>, scalar_prefetch = 0 : i64, scratch_operands = 0 : i64, tpu.core_type = #tpu.core_type<tc>, window_params = [{transform_indices = @transform_0, window_bounds = array<i64: 1, 16, 128>}, {transform_indices = @transform_1, window_bounds = array<i64: 1, 16, 128>}]} {
    %c0 = arith.constant 0 : index
    %c0_0 = arith.constant 0 : index
    %c0_1 = arith.constant 0 : index
    %0 = vector.load %arg2[%c0, %c0_0, %c0_1] : memref<1x16x128xf32, #tpu.memory_space<vmem>>, vector<1x16x128xf32>
    %cst = arith.constant dense<0xFF800000> : vector<1x128xf32>
    %1 = vector.multi_reduction <maximumf>, %0, %cst [1] : vector<1x16x128xf32> to vector<1x128xf32>
    %2 = vector.shape_cast %1 : vector<1x128xf32> to vector<1x1x128xf32>
    %3 = vector.broadcast %2 : vector<1x1x128xf32> to vector<1x16x128xf32>
    %4 = arith.subf %0, %3 : vector<1x16x128xf32>
    %5 = math.exp %4 : vector<1x16x128xf32>
    %cst_2 = arith.constant dense<0.000000e+00> : vector<1x128xf32>
    %6 = vector.multi_reduction <add>, %5, %cst_2 [1] : vector<1x16x128xf32> to vector<1x128xf32>
    %7 = vector.shape_cast %6 : vector<1x128xf32> to vector<1x1x128xf32>
    %8 = vector.broadcast %7 : vector<1x1x128xf32> to vector<1x16x128xf32>
    %9 = arith.divf %5, %8 : vector<1x16x128xf32>
    %c0_3 = arith.constant 0 : index
    %c0_4 = arith.constant 0 : index
    %c0_5 = arith.constant 0 : index
    %10 = vector.load %arg3[%c0_3, %c0_4, %c0_5] : memref<1x16x128xf32, #tpu.memory_space<vmem>>, vector<1x16x128xf32>
    tpu.vector_store %arg3[%c0_3, %c0_4, %c0_5], %9 {strides = array<i32>} : memref<1x16x128xf32, #tpu.memory_space<vmem>>, vector<1x16x128xf32>,
    return
  }
  func.func @transform_0(%arg0: i32, %arg1: i32) -> (i32, i32, i32) {
    %c0_i32 = arith.constant 0 : i32
    %c0_i32_0 = arith.constant 0 : i32
    return %arg0, %c0_i32, %arg1 : i32, i32, i32
  }
  func.func @transform_1(%arg0: i32, %arg1: i32) -> (i32, i32, i32) {
    %c0_i32 = arith.constant 0 : i32
    %c0_i32_0 = arith.constant 0 : i32
    return %arg0, %c0_i32, %arg1 : i32, i32, i32
  }
}

</mosaic_0001>

<bundles_post_ra>
// kernel: tpu_custom_call.1
= control target key start
LH: loop header
LB: loop body
LE: loop exit
PB: predicated region body
PF: predicated region fallthrough
CT: control target
= control target key end

     0   :  { %6 = vsyncpa [#allocation3], 0  ;;  %s673_s0 = inlined_call_operand.hbm [shape: f32[2,16,128], index: 0, kind: input, shape index: {}]   ;;  %s674_s1 = inlined_call_operand.hbm [shape: f32[2,16,128], index: 1, kind: output, shape index: {}]  }
   0x1   :  { %8 = vsyncpa [#allocation3 + $0x1], 0 }
   0x2   :  { %9 = vsyncpa [#allocation4], 0 }
   0x3   :  { %11 = vsyncpa [#allocation4 + $0x1], 0  ;;  %s498_s6 = smov 0   ;;  %s500_s7 = smov 0  }
   0x4   :  { %s502_s8 = smov 0   ;;  %s504_s9 = smov 0  }
   0x5   :  { %s506_s10 = smov 0   ;;  %s508_s11 = smov 0  }
   0x6 LB: > { %s279_s12 = sadd.s32 4294967295, %s480_s11   ;;  %s280_s13 = sadd.s32 4294967294, %s480_s11   ;;  %s480_s11 = sphi %s508_s11, %s17_s11   ;;  %s476_s10 = sphi %s506_s10, %s689_s10   ;;  %s472_s9 = sphi %s504_s9, %s688_s9   ;;  %s468_s8 = sphi %s502_s8, %s687_s8   ;;  %s464_s7 = sphi %s500_s7, %s686_s7   ;;  %s460_s6 = sphi %s498_s6, %s685_s6  }
   0x7   : > { %s29_s14 = sadd.s32 1, %s476_s10  ;;  %s38_s15 = sadd.s32 1, %s468_s8 }
   0x8   : > { %p31_p0 = scmp.ge.s32.totalorder %s29_s14, 2  ;;  %p45_p1 = scmp.ne.s32.totalorder %s468_s8, %s464_s7 }
   0x9   : > { %p46_p2 = scmp.eq.s32.totalorder %s480_s11, 0  ;;  %p51_p3 = scmp.ne.s32.totalorder %s464_s7, %s460_s6 }
   0xa   : > { %s691_s14 = smov (%p31_p0, %s29_s14), 0  ;;  %p52_p5 = scmp.eq.s32.totalorder %s279_s12, 0 }
   0xb   : > { %p539_p4 = por %p46_p2, %p45_p1  ;;  %s33_s17 = ssub.s32 %s476_s10, %s691_s14 }
   0xc   : > { %p77_p6 = scmp.eq.s32.totalorder %s279_s12, 1  ;;  %p36_p7 = scmp.eq.s32.totalorder %s33_s17, 0 }
   0xd   : > { %p545_p8 = por %p52_p5, %p51_p3  ;;  %p83_p10 = scmp.eq.s32.totalorder %s280_s13, 1 }
   0xe   : > { %p549_p9 = por %p77_p6, %p45_p1  ;;  %p308_p13 = scmp.lt.s32.totalorder %s480_s11, 2 }
   0xf   : > { %s554_s20 = scalar_select %p36_p7, %s468_s8, %s38_s15  }
  0x10   : > { %s678_s19 = scalar_select %p549_p9, 1, 0 }
  0x11   : > { %p556_p11 = por %p83_p10, %p51_p3  ;;  %s103_s22 = sand.u32 1, %s468_s8  }
  0x12   : > { %s283_s23 = sshll.u32 %s103_s22, 4  ;;  %s294_s24 = sshll.u32 %s476_s10, 8 }
  0x13   : > { %s679_s21 = scalar_select %p556_p11, 1, 0 }
  0x14   : > { %s567_s27 = scalar_lea.hbm %s673_s0, %s294_s24  ;;  %s107_s28 = scalar_lea.vmem [#allocation2], %s283_s23 }
  0x15   : > { %s115_s29 = sshll.u32 %s107_s28, 4  ;;  %p573_p0 = pnand %p308_p13, %p539_p4  ;;  %s569_s29 = int_to_ptr.vmem [resolvable:$true] %s115_s29 }
  0x16   : > { %s578_s2 = scalar_lea.sflag [#allocation3], %s103_s22  ;;  %s368_s3 = scalar_lea.hbm %s567_s27, 256 }
  0x17   : > { %p369_p2 = scmp.ne.s32.totalorder %s567_s27, %s368_s3  ;;  %p370_p3 = pneg %p573_p0 }
  0x18   : > { %s373_s12 = scalar_lea.hbm %s673_s0, 512  ;;  %p374_p4 = scmp.lt.u32.totalorder %s567_s27, %s673_s0 }
  0x19   : > { %p371_p5 = pnand %p370_p3, %p369_p2  ;;  %p375_p7 = scmp.lt.u32.totalorder %s373_s12, %s368_s3 }
  0x1a   : > { %p377_p13 = scmp.lt.u32.totalorder %s368_s3, %s567_s27 }
  0x1b   : > { %p372_p6 = pneg %p371_p5  ;;  %p376_p10 = por %p375_p7, %p374_p4 }
  0x1d   : > { %p378_p12 = por %p377_p13, %p376_p10 }
  0x1f   : > { %p379_p1 = pnand %p378_p12, %p372_p6 }
  0x21   : > { %382 = shalt.err (!%p379_p1)
}
  0x22   : > { %s383_s16 = scalar_lea.vmem %s569_s29, 256  ;;  %s482_s17 = smov [#allocation2]  }
  0x23   : > { %p384_p2 = scmp.ne.s32.totalorder %s569_s29, %s383_s16  ;;  %s388_s22 = sshll.u32 %s482_s17, 4  ;;  %s389_s22 = int_to_ptr.vmem [resolvable:$false] %s388_s22 }
  0x24   : > { %s390_s23 = scalar_lea.vmem %s389_s22, 512  ;;  %p391_p9 = scmp.lt.s32.totalorder %s569_s29, %s389_s22 }
  0x25   : > { %p386_p5 = pnand %p384_p2, %p370_p3  ;;  %p392_p4 = scmp.lt.s32.totalorder %s390_s23, %s383_s16 }
  0x27   : > { %p387_p11 = pneg %p386_p5  ;;  %p393_p7 = por %p392_p4, %p391_p9 }
  0x29   : > { %p394_p10 = pnand %p393_p7, %p387_p11 }
  0x2b   : > { %397 = shalt.err (!%p394_p10)
}
  0x2c   : > { %s483_s24 = smov 128   ;;  %s484_s25 = smov 8  }
  0x2d   : > { %303 = dma.hbm_to_vmem [thread:$0]  (!%p573_p0), %s567_s27, 256, %s569_s29, %s578_s2, %s483_s24, %s483_s24, %s484_s25  }
  0x2e   : > { %p123_p12 = scmp.lt.s32.totalorder %s480_s11, 3  ;;  %p681_p1 = scmp.ge.s32.totalorder %s480_s11, 1 }
  0x30   : > { %p124_p3 = pnand %p681_p1, %p123_p12 }
  0x31   : > { %s610_s26 = sand.u32 (!%p124_p3), 1, %s464_s7  }
  0x32   : > { %127 = sbr.rel (%p124_p3) target bundleno = 131 (0x83), region = 24  ;;  %s287_s28 = sshll.u32 (!%p124_p3), %s610_s26, 4 }
  0x33   : > { %s130_s3 = scalar_lea.sflag (!%p124_p3), [#allocation3], %s610_s26  ;;  %s133_s4 = scalar_lea.vmem (!%p124_p3), [#allocation2], %s287_s28 }
  0x39   : > { %451 = dma.done.wait (%p545_p8), %s130_s3, 256  }
  0x3a   : > { %453 = vsyncadd (%p545_p8), %s130_s3, 4294967040  ;;  %v152_v0 = vld [vmem:[%s133_s4] sm:$0xff]  ;;  %v153_v1 = vld [vmem:[%s133_s4 + $0x8] sm:$0xff]  ;;  %s151_s18 = scalar_lea.vmem [#allocation5], %s287_s28  ;;  %s295_s29 = sshll.u32 %s472_s9, 8 }
  0x3b   : > { %v154_v2 = vmax.f32 %v152_v0, %v153_v1  ;;  %s194_s27 = sshll.u32 %s151_s18, 4  ;;  %s624_s5 = scalar_lea.hbm %s674_s1, %s295_s29  ;;  %s619_s27 = int_to_ptr.vmem [resolvable:$true] %s194_s27 }
  0x3c   : > { %s180_s12 = scalar_lea.sflag [#allocation4], %s610_s26  ;;  %s398_s13 = scalar_lea.vmem %s619_s27, 256 }
  0x3d   : > { %v155_v3 = vrot.slane %v154_v2, 4  ;;  %p399_p8 = scmp.ne.s32.totalorder %s619_s27, %s398_s13  ;;  %p682_p9 = scmp.ne.s32.totalorder %s678_s19, 0 }
  0x3e   : > { %s485_s9 = smov [#allocation5]  }
  0x3f   : > { %v156_v4 = vmax.f32 %v154_v2, %v155_v3  ;;  %p400_p11 = pnand %p399_p8, %p682_p9  ;;  %s402_s15 = sshll.u32 %s485_s9, 4  ;;  %s403_s15 = int_to_ptr.vmem [resolvable:$false] %s402_s15 }
  0x40   : > { %s404_s16 = scalar_lea.vmem %s403_s15, 512  ;;  %p405_p6 = scmp.lt.s32.totalorder %s619_s27, %s403_s15 }
  0x41   : > { %v157_v5 = vrot.slane %v156_v4, 2  ;;  %p401_p0 = pneg %p400_p11  ;;  %p406_p13 = scmp.lt.s32.totalorder %s404_s16, %s398_s13 }
  0x43   : > { %v158_v6 = vmax.f32 %v156_v4, %v157_v5  ;;  %p407_p2 = por %p406_p13, %p405_p6 }
  0x45   : > { %v159_v7 = vrot.slane %v158_v6, 1  ;;  %p408_p5 = pnand %p407_p2, %p401_p0 }
  0x47   : > { %v160_v8 = vmax.f32 %v158_v6, %v159_v7 }
  0x49   : > { %v161_v9 = vsub.f32 %v152_v0, %v160_v8  ;;  %v162_v10 = vsub.f32 %v153_v1, %v160_v8 }
  0x4b   : > { %v163_v11 = vmul.f32 1.442695, %v161_v9  ;;  %v165_v12 = vmul.f32 1.442695, %v162_v10 }
  0x4d   : > { %362 = vpow2.f32 %v163_v11 }
  0x4e   : > { %364 = vpow2.f32 %v165_v12 }
  0x57   : > { %v363_v13 = vpop.eup %362 }
  0x58   : > { %v365_v14 = vpop.eup %364 }
  0x59   : > { %v167_v15 = vadd.f32 %v365_v14, %v363_v13 }
  0x5b   : > { %v168_v16 = vrot.slane %v167_v15, 4 }
  0x5d   : > { %v169_v17 = vadd.f32 %v168_v16, %v167_v15 }
  0x5f   : > { %v170_v18 = vrot.slane %v169_v17, 2 }
  0x61   : > { %v171_v19 = vadd.f32 %v170_v18, %v169_v17 }
  0x63   : > { %v172_v20 = vrot.slane %v171_v19, 1 }
  0x65   : > { %v173_v21 = vadd.f32 %v172_v20, %v171_v19 }
  0x67   : > { %366 = vrcp.f32 %v173_v21 }
  0x71   : > { %v367_v22 = vpop.eup %366 }
  0x72   : > { %v175_v23 = vmul.f32 %v367_v22, %v363_v13  ;;  %v176_v24 = vmul.f32 %v367_v22, %v365_v14 }
  0x74   : > { %177 = vst [vmem:[%s151_s18] sm:$0xff] %v175_v23  ;;  %178 = vst [vmem:[%s151_s18 + $0x8] sm:$0xff] %v176_v24 }
  0x75   : > { %411 = shalt.err (!%p408_p5)
}
  0x76   : > { %s412_s17 = scalar_lea.hbm %s624_s5, 256  ;;  %s416_s24 = scalar_lea.hbm %s674_s1, 512 }
  0x77   : > { %p413_p4 = scmp.ne.s32.totalorder %s624_s5, %s412_s17  ;;  %p417_p12 = scmp.lt.u32.totalorder %s624_s5, %s674_s1 }
  0x78   : > { %p418_p1 = scmp.lt.u32.totalorder %s416_s24, %s412_s17  ;;  %p420_p8 = scmp.lt.u32.totalorder %s412_s17, %s624_s5 }
  0x79   : > { %p414_p7 = pnand %p413_p4, %p682_p9 }
  0x7a   : > { %p419_p3 = por %p418_p1, %p417_p12 }
  0x7b   : > { %p415_p10 = pneg %p414_p7 }
  0x7c   : > { %p421_p11 = por %p420_p8, %p419_p3 }
  0x7e   : > { %p422_p0 = pnand %p421_p11, %p415_p10 }
  0x80   : > { %425 = shalt.err (!%p422_p0)
}
  0x81   : > { %s486_s3 = smov 128   ;;  %s487_s4 = smov 8  }
  0x82   : > { %298 = dma.vmem_to_hbm [thread:$0]  (%p682_p9), %s619_s27, 256, %s624_s5, %s180_s12, %s486_s3, %s486_s3, %s487_s4  }
  0x83 PF: > { %s209_s18 = sand.u32 1, %s460_s6   ;;  %p683_p6 = scmp.ne.s32.totalorder %s679_s21, 0 }
  0x84   : > { %p684_p13 = scmp.ge.s32.totalorder %s480_s11, 2  ;;  %s210_s29 = scalar_lea.sflag [#allocation4], %s209_s18 }
  0x86   : > { %p305_p2 = pnand %p684_p13, %p683_p6 }
  0x88   : > { %455 = dma.done.wait (!%p305_p2), %s210_s29, 256  }
  0x89   : > { %457 = vsyncadd (!%p305_p2), %s210_s29, 4294967040  ;;  %s17_s11 = sadd.s32 1, %s480_s11   ;;  %s685_s6 = smov %s464_s7 }
  0x8a   : > { %p14_p5 = scmp.ge.s32.totalorder %s17_s11, 4   ;;  %s686_s7 = smov %s468_s8 }
  0x8b   : > { %s687_s8 = smov %s554_s20  ;;  %s688_s9 = smov %s476_s10 }
  0x8c   : > { %s689_s10 = smov %s691_s14  ;;  %16 = sbr.rel (!%p14_p5) target bundleno = 6 (0x6), region = 69 }
  0x93   :  { %215 = vsyncpa [#allocation3], 1 }
  0x94   :  { %217 = vsyncpa [#allocation3 + $0x1], 1 }
  0x95   :  { %218 = vsyncpa [#allocation4], 1 }
  0x96   :  { %220 = vsyncpa [#allocation4 + $0x1], 1 }

</bundles_post_ra>
